<compile_context>
chip_gen: v7x
topology: tpu7x:2x2x1
jax: 0.10.0
libtpu: 0.0.40
codegen_flags: <defaults>
</compile_context>

<pallas_src>
import functools

import jax
import jax.numpy as jnp
from jax.experimental import pallas as pl
from jax.experimental.pallas import tpu as pltpu

IN_FEATURES = 25
OUT_FEATURES = 6400  # = 5 * 5 * 1 * 256


def _linear_kernel(x_ref, w_ref, b_ref, o_ref):
    # x_ref: (TM, 25) f32   w_ref: (25, 6400) bf16   b_ref: (1, 6400) f32
    # o_ref: (TM, 6400) f32
    x = x_ref[...].astype(jnp.bfloat16)          # bf16 x bf16 -> MXU, f32 accumulate
    o_ref[...] = (
        jnp.dot(x, w_ref[...], preferred_element_type=jnp.float32) + b_ref[...]
    ).astype(o_ref.dtype)


def _cost(n):
    return pl.CostEstimate(
        flops=2 * n * IN_FEATURES * OUT_FEATURES,
        transcendentals=0,
        bytes_accessed=(
            n * IN_FEATURES * 4            # x (f32)
            + IN_FEATURES * OUT_FEATURES * 2  # W (bf16)
            + OUT_FEATURES * 4             # bias (f32)
            + n * OUT_FEATURES * 4         # y (f32)
        ),
    )


def linear_pallas(x2d, w_bf16, b, *, tm=512):
    """y = x2d @ W + b.  Single block for small N; row-tiled for large N."""
    n, k = x2d.shape
    k2, m = w_bf16.shape
    assert k == k2 == IN_FEATURES and m == OUT_FEATURES
    b2d = b.reshape(1, m).astype(jnp.float32)

    if n <= tm:
        # --- single block: no grid loop, everything resident in VMEM ---
        vmem = pl.BlockSpec(memory_space=pltpu.MemorySpace.VMEM)
        return pl.pallas_call(
            _linear_kernel,
            out_shape=jax.ShapeDtypeStruct((n, m), jnp.float32),
            in_specs=[vmem, vmem, vmem],
            out_specs=vmem,
            cost_estimate=_cost(n),
        )(x2d, w_bf16, b2d)

    # --- large batch: tile over rows, keep W + bias fully resident ---
    n_pad = ((n + tm - 1) // tm) * tm
    if n_pad != n:
        x2d = jnp.pad(x2d, ((0, n_pad - n), (0, 0)))
    grid = (n_pad // tm,)
    out = pl.pallas_call(
        _linear_kernel,
        out_shape=jax.ShapeDtypeStruct((n_pad, m), jnp.float32),
        grid_spec=pl.GridSpec(
            grid=grid,
            in_specs=[
                pl.BlockSpec((tm, k), lambda i: (i, 0)),   # x row tile
                pl.BlockSpec((k, m), lambda i: (0, 0)),    # W resident (DMA'd once)
                pl.BlockSpec((1, m), lambda i: (0, 0)),    # bias resident
            ],
            out_specs=pl.BlockSpec((tm, m), lambda i: (i, 0)),
        ),
        compiler_params=pltpu.CompilerParams(
            dimension_semantics=("parallel",),
        ),
        cost_estimate=_cost(n_pad),
    )(x2d, w_bf16, b2d)
    return out[:n]


@functools.partial(jax.jit, static_argnums=())
def model_forward(x, w_bf16, b):
    """Mirrors Model.forward: view(-1,25) -> Linear(25,6400) -> view(-1,5,5,1,256)."""
    x2d = x.reshape(-1, IN_FEATURES).astype(jnp.float32)
    logits = linear_pallas(x2d, w_bf16, b)
    return logits.reshape(-1, 5, 5, 1, 256)


if __name__ == "__main__":
    key = jax.random.PRNGKey(0)
    kx, kw, kb = jax.random.split(key, 3)

    # Parameters with nn.Linear(25, 6400) init bounds, stored as (in, out) = weight.T.
    bound = 1.0 / (IN_FEATURES ** 0.5)
    w_f32 = jax.random.uniform(
        kw, (IN_FEATURES, OUT_FEATURES), jnp.float32, -bound, bound
    )
    b = jax.random.uniform(kb, (OUT_FEATURES,), jnp.float32, -bound, bound)
    w_bf16 = w_f32.astype(jnp.bfloat16)   # bandwidth-dominant operand kept in bf16

    # Example input: batch of 2 single-channel 5x5 images (NCHW), as in the
    # PixelDefend unit test (pixel CNN over 5x5x1 images).
    x = jax.random.uniform(kx, (2, 1, 5, 5), jnp.float32)

    out = model_forward(x, w_bf16, b)
    out = jax.block_until_ready(out)
    assert out.shape == (2, 5, 5, 1, 256), out.shape

    # Reference with the same bf16-quantized operands the kernel sees.
    x2d_q = x.reshape(-1, 25).astype(jnp.bfloat16).astype(jnp.float32)
    w_q = w_bf16.astype(jnp.float32)
    ref = (x2d_q @ w_q + b).reshape(-1, 5, 5, 1, 256)
    assert jnp.allclose(out, ref, atol=1e-3, rtol=1e-3)

    print("KERNEL_OK")
</pallas_src>

<mosaic_0001>
module attributes {stable_mosaic.version = 11 : i64} {
  func.func @_linear_kernel(%arg0: memref<2x25xf32, #tpu.memory_space<vmem>>, %arg1: memref<25x6400xbf16, #tpu.memory_space<vmem>>, %arg2: memref<1x6400xf32, #tpu.memory_space<vmem>>, %arg3: memref<2x6400xf32, #tpu.memory_space<vmem>>) attributes {dimension_semantics = [], scalar_prefetch = 0 : i64, scratch_operands = 0 : i64, tpu.core_type = #tpu.core_type<tc>} {
    %c0 = arith.constant 0 : index
    %c0_0 = arith.constant 0 : index
    %0 = vector.load %arg0[%c0, %c0_0] : memref<2x25xf32, #tpu.memory_space<vmem>>, vector<2x25xf32>
    %1 = arith.truncf %0 : vector<2x25xf32> to vector<2x25xbf16>
    %c0_1 = arith.constant 0 : index
    %c0_2 = arith.constant 0 : index
    %2 = vector.load %arg1[%c0_1, %c0_2] : memref<25x6400xbf16, #tpu.memory_space<vmem>>, vector<25x6400xbf16>
    %cst = arith.constant dense<0.000000e+00> : vector<2x6400xf32>
    %3 = tpu.matmul %1, %2, %cst {dimension_numbers = #tpu.dot_dimension_numbers<[1], [0], [0], [1], [0, 0, 1, 1], [], []>} : vector<2x25xbf16>, vector<25x6400xbf16>, vector<2x6400xf32> -> vector<2x6400xf32>
    %c0_3 = arith.constant 0 : index
    %c0_4 = arith.constant 0 : index
    %4 = vector.load %arg2[%c0_3, %c0_4] : memref<1x6400xf32, #tpu.memory_space<vmem>>, vector<1x6400xf32>
    %5 = vector.broadcast %4 : vector<1x6400xf32> to vector<2x6400xf32>
    %6 = arith.addf %3, %5 : vector<2x6400xf32>
    %c0_5 = arith.constant 0 : index
    %c0_6 = arith.constant 0 : index
    %7 = vector.load %arg3[%c0_5, %c0_6] : memref<2x6400xf32, #tpu.memory_space<vmem>>, vector<2x6400xf32>
    tpu.vector_store %arg3[%c0_5, %c0_6], %6 {strides = array<i32>} : memref<2x6400xf32, #tpu.memory_space<vmem>>, vector<2x6400xf32>,
    return
  }
}

</mosaic_0001>

<bundles_post_ra>
// kernel: model_forward.1
= control target key start
LH: loop header
LB: loop body
LE: loop exit
PB: predicated region body
PF: predicated region fallthrough
CT: control target
= control target key end

     0   :  { %8 = vsyncpa [#allocation3], 0  ;;  %s2627_s12 = smov [#allocation2]   ;;  %s2949_s0 = inlined_call_operand.vmem [shape: f32[2,25], index: 0, kind: input, shape index: {}]   ;;  %s2950_s1 = inlined_call_operand.hbm [shape: bf16[25,6400], index: 1, kind: input, shape index: {}]   ;;  %s2951_s2 = inlined_call_operand.vmem [shape: f32[1,6400], index: 2, kind: input, shape index: {}]   ;;  %s2952_s3 = inlined_call_operand.vmem [shape: f32[2,6400], index: 3, kind: output, shape index: {}]  }
   0x1   :  { %s16_s13 = sshll.u32 %s2627_s12, 4  ;;  %s2603_s16 = scalar_lea.hbm %s2950_s1, 12800  ;;  %s17_s13 = int_to_ptr.vmem [resolvable:$true] %s16_s13 }
   0x2   :  { %p2604_p0 = scmp.ne.s32.totalorder %s2950_s1, %s2603_s16  ;;  %p2607_p1 = scmp.lt.u32.totalorder %s2603_s16, %s2950_s1 }
   0x4   :  { %p2609_p2 = pnand %p2607_p1, %p2604_p0 }
   0x6   :  { %2612 = shalt.err (!%p2609_p2)
}
   0x7   :  { %s2613_s21 = scalar_lea.vmem %s17_s13, 12800  ;;  %p2618_p4 = scmp.lt.s32.totalorder %s17_s13, %s17_s13 }
   0x8   :  { %p2614_p3 = scmp.ne.s32.totalorder %s17_s13, %s2613_s21  ;;  %p2619_p5 = scmp.lt.s32.totalorder %s2613_s21, %s2613_s21 }
   0xa   :  { %p2620_p6 = por %p2619_p5, %p2618_p4 }
   0xc   :  { %p2621_p7 = pnand %p2620_p6, %p2614_p3 }
   0xe   :  { %2624 = shalt.err (!%p2621_p7)
}
   0xf   :  { %s2628_s22 = smov 3200   ;;  %s2629_s23 = smov 200  }
  0x10   :  { %22 = dma.hbm_to_vmem [thread:$0]  %s2950_s1, 12800, %s17_s13, [#allocation3], %s2628_s22, %s2628_s22, %s2629_s23  }
  0x11   :  { %2625 = dma.done.wait [#allocation3], 12800  }
  0x12   :  { %2626 = vsyncadd [#allocation3], 4294954496  ;;  %v2630_v0 = vmov 0   ;;  %vm849_vm0 = vcmask 1043456   ;;  %vm850_vm1 = vcmask 1044480   ;;  %v2631_v1 = vmov 65535  }
  0x13   :  { %1035 = vmatprep.mubr.bf16.mxu0 %v2630_v0  ;;  %1076 = vmatprep.mubr.bf16.mxu1 %v2630_v0  ;;  %v851_v2 = vsel %vm849_vm0, 4294967295, %v2631_v1  ;;  %v2453_v3 = vld [vmem:[#allocation2 + $0x4] ss:$200 sps:$4 sm:$0xff]   ;;  %v2457_v5 = vld [vmem:[#allocation2] ss:$200 sps:$4 sm:$0xff]   ;;  %vm845_vm2 = vcmask 203776  }
  0x14   :  { %v2455_v4 = vld [vmem:[#allocation2 + $0xc] ss:$200 sps:$4 sm:$0xff]   ;;  %1003 = vmatprep.subr.bf16.mxu0 %v2453_v3  ;;  %v2458_v6 = vld [vmem:[#allocation2 + $0x8] ss:$200 sps:$4 sm:$0xff]   ;;  %v2667_v7 = vsel %vm850_vm1, %v851_v2, 0 }
  0x15   :  { %1044 = vmatprep.subr.bf16.mxu1 %v2455_v4  ;;  %v2459_v8 = vld [vmem:[#allocation2 + $0x194] ss:$200 sps:$4 sm:$0x1f]   ;;  %1004 = vmatpush1.bf16.msra.mxu0 %v2457_v5  ;;  %v2463_v11 = vld [vmem:[#allocation2 + $0x190] ss:$200 sps:$4 sm:$0x1f]  }
  0x16   :  { %1045 = vmatpush1.bf16.msra.mxu1 %v2458_v6  ;;  %v2461_v9 = vld [vmem:[#allocation2 + $0x19c] ss:$200 sps:$4 sm:$0x1f]   ;;  %v857_v10 = vand.u32 %v2459_v8, %v2667_v7  ;;  %v2464_v12 = vld [vmem:[#allocation2 + $0x198] ss:$200 sps:$4 sm:$0x1f]   ;;  %v854_v15 = vand.u32 %v2463_v11, %v2667_v7 }
  0x17   :  { %v863_v13 = vand.u32 %v2461_v9, %v2667_v7  ;;  %v29_v14 = vld [vmem:[%s2949_s0] sm:$0x3]  ;;  %v860_v16 = vand.u32 %v2464_v12, %v2667_v7  ;;  %v2465_v17 = vld [vmem:[#allocation2 + $0x10] ss:$200 sps:$4 sm:$0xff]   ;;  %v2467_v18 = vld [vmem:[#allocation2 + $0x14] ss:$200 sps:$4 sm:$0xff]  }
  0x18   :  { %1005 = vmatprep.subr.bf16.mxu0 %v857_v10  ;;  %v2676_v19 = vpack.c.bf16 %v29_v14, %v29_v14  ;;  %v2468_v20 = vld [vmem:[#allocation2 + $0x18] ss:$200 sps:$4 sm:$0xff]   ;;  %v2470_v21 = vld [vmem:[#allocation2 + $0x1c] ss:$200 sps:$4 sm:$0xff]   ;;  %v2482_v31 = vld [vmem:[#allocation2 + $0x2c] ss:$200 sps:$4 sm:$0xff]  }
  0x19   :  { %1046 = vmatprep.subr.bf16.mxu1 %v863_v13  ;;  %1006 = vmatpush1.bf16.msra.mxu0 %v854_v15  ;;  %v2471_v22 = vld [vmem:[#allocation2 + $0x1a0] ss:$200 sps:$4 sm:$0x1f]   ;;  %v2473_v23 = vld [vmem:[#allocation2 + $0x1a4] ss:$200 sps:$4 sm:$0x1f]  }
  0x1a   :  { %1047 = vmatpush1.bf16.msra.mxu1 %v860_v16  ;;  %1085 = vmatprep.subr.bf16.mxu0 %v2467_v18  ;;  %v2474_v24 = vld [vmem:[#allocation2 + $0x1a8] ss:$200 sps:$4 sm:$0x1f]   ;;  %v2476_v25 = vld [vmem:[#allocation2 + $0x1ac] ss:$200 sps:$4 sm:$0x1f]   ;;  %v869_v26 = vand.u32 %v2473_v23, %v2667_v7  ;;  %v866_v28 = vand.u32 %v2471_v22, %v2667_v7 }
  0x1b   :  { %1126 = vmatprep.subr.bf16.mxu1 %v2470_v21  ;;  %v875_v27 = vand.u32 %v2476_v25, %v2667_v7  ;;  %v872_v29 = vand.u32 %v2474_v24, %v2667_v7  ;;  %v2479_v30 = vld [vmem:[#allocation2 + $0x24] ss:$200 sps:$4 sm:$0xff]   ;;  %v2477_v32 = vld [vmem:[#allocation2 + $0x20] ss:$200 sps:$4 sm:$0xff]   ;;  %v2491_v40 = vld [vmem:[#allocation2 + $0x34] ss:$200 sps:$4 sm:$0xff]  }
  0x1c   :  { %2421 = vmatmul.mubr.msk.bf16.vlgmr.msra.gmra.mrb[0].mxu0 %vm845_vm2, %v2676_v19  ;;  %v2480_v33 = vld [vmem:[#allocation2 + $0x28] ss:$200 sps:$4 sm:$0xff]   ;;  %v2485_v35 = vld [vmem:[#allocation2 + $0x1b4] ss:$200 sps:$4 sm:$0x1f]  }
  0x1d   :  { %2422 = vmatmul.mubr.msk.bf16.vlgmr.msra.gmra.mrb[0].mxu1 %vm845_vm2, %v2676_v19  ;;  %1086 = vmatpush1.bf16.msra.mxu0 %v2465_v17  ;;  %v2483_v34 = vld [vmem:[#allocation2 + $0x1b0] ss:$200 sps:$4 sm:$0x1f]   ;;  %v2488_v37 = vld [vmem:[#allocation2 + $0x1bc] ss:$200 sps:$4 sm:$0x1f]   ;;  %v881_v38 = vand.u32 %v2485_v35, %v2667_v7 }
  0x1e   :  { %1127 = vmatpush1.bf16.msra.mxu1 %v2468_v20  ;;  %1087 = vmatprep.subr.bf16.mxu0 %v869_v26  ;;  %v2486_v36 = vld [vmem:[#allocation2 + $0x1b8] ss:$200 sps:$4 sm:$0x1f]   ;;  %v887_v39 = vand.u32 %v2488_v37, %v2667_v7  ;;  %v878_v41 = vand.u32 %v2483_v34, %v2667_v7  ;;  %v2494_v43 = vld [vmem:[#allocation2 + $0x3c] ss:$200 sps:$4 sm:$0xff]  }
  0x1f   :  { %1117 = vmatprep.mubr.bf16.mxu0 %v2630_v0  ;;  %1128 = vmatprep.subr.bf16.mxu1 %v875_v27  ;;  %v884_v42 = vand.u32 %v2486_v36, %v2667_v7  ;;  %v2497_v44 = vld [vmem:[#allocation2 + $0x1c4] ss:$200 sps:$4 sm:$0x1f]   ;;  %v2489_v46 = vld [vmem:[#allocation2 + $0x30] ss:$200 sps:$4 sm:$0xff]  }
  0x20   :  { %1158 = vmatprep.mubr.bf16.mxu1 %v2630_v0  ;;  %v2500_v45 = vld [vmem:[#allocation2 + $0x1cc] ss:$200 sps:$4 sm:$0x1f]   ;;  %v2495_v47 = vld [vmem:[#allocation2 + $0x1c0] ss:$200 sps:$4 sm:$0x1f]   ;;  %v893_v50 = vand.u32 %v2497_v44, %v2667_v7 }
  0x21   :  { %1088 = vmatpush1.bf16.msra.mxu0 %v866_v28  ;;  %v2492_v48 = vld [vmem:[#allocation2 + $0x38] ss:$200 sps:$4 sm:$0xff]   ;;  %v2498_v49 = vld [vmem:[#allocation2 + $0x1c8] ss:$200 sps:$4 sm:$0x1f]   ;;  %v899_v51 = vand.u32 %v2500_v45, %v2667_v7  ;;  %v890_v53 = vand.u32 %v2495_v47, %v2667_v7 }
  0x22   :  { %1129 = vmatpush1.bf16.msra.mxu1 %v872_v29  ;;  %1167 = vmatprep.subr.bf16.mxu0 %v2479_v30  ;;  %v2503_v52 = vld [vmem:[#allocation2 + $0x44] ss:$200 sps:$4 sm:$0xff]   ;;  %v896_v54 = vand.u32 %v2498_v49, %v2667_v7  ;;  %v2509_v56 = vld [vmem:[#allocation2 + $0x1d4] ss:$200 sps:$4 sm:$0x1f]  }
  0x23   :  { %1208 = vmatprep.subr.bf16.mxu1 %v2482_v31  ;;  %v2506_v55 = vld [vmem:[#allocation2 + $0x4c] ss:$200 sps:$4 sm:$0xff]   ;;  %v2512_v57 = vld [vmem:[#allocation2 + $0x1dc] ss:$200 sps:$4 sm:$0x1f]   ;;  %v905_v62 = vand.u32 %v2509_v56, %v2667_v7 }
  0x24   :  { %2423 = vmatmul.mubr.msk.bf16.vlgmr.msra.gmra.mrb[4].mxu0 %vm845_vm2, %v2676_v19  ;;  %v2501_v58 = vld [vmem:[#allocation2 + $0x40] ss:$200 sps:$4 sm:$0xff]   ;;  %v2507_v60 = vld [vmem:[#allocation2 + $0x1d0] ss:$200 sps:$4 sm:$0x1f]   ;;  %v911_v63 = vand.u32 %v2512_v57, %v2667_v7 }
  0x25   :  { %2424 = vmatmul.mubr.msk.bf16.vlgmr.msra.gmra.mrb[4].mxu1 %vm845_vm2, %v2676_v19  ;;  %1168 = vmatpush1.bf16.msra.mxu0 %v2477_v32  ;;  %v2504_v59 = vld [vmem:[#allocation2 + $0x48] ss:$200 sps:$4 sm:$0xff]   ;;  %v2510_v61 = vld [vmem:[#allocation2 + $0x1d8] ss:$200 sps:$4 sm:$0x1f]   ;;  %v902_v3 = vand.u32 %v2507_v60, %v2667_v7 }
  0x26   :  { %1209 = vmatpush1.bf16.msra.mxu1 %v2480_v33  ;;  %1169 = vmatprep.subr.bf16.mxu0 %v881_v38  ;;  %v2515_v1 = vld [vmem:[#allocation2 + $0x54] ss:$200 sps:$4 sm:$0xff]   ;;  %v908_v4 = vand.u32 %v2510_v61, %v2667_v7  ;;  %v2521_v5 = vld [vmem:[#allocation2 + $0x1e4] ss:$200 sps:$4 sm:$0x1f]  }
  0x27   :  { %1210 = vmatprep.subr.bf16.mxu1 %v887_v39  ;;  %1199 = vmatprep.mubr.bf16.mxu0 %v2630_v0  ;;  %v2518_v2 = vld [vmem:[#allocation2 + $0x5c] ss:$200 sps:$4 sm:$0xff]   ;;  %v2524_v6 = vld [vmem:[#allocation2 + $0x1ec] ss:$200 sps:$4 sm:$0x1f]   ;;  %v917_v12 = vand.u32 %v2521_v5, %v2667_v7 }
  0x28   :  { %1240 = vmatprep.mubr.bf16.mxu1 %v2630_v0  ;;  %v2513_v8 = vld [vmem:[#allocation2 + $0x50] ss:$200 sps:$4 sm:$0xff]   ;;  %v2519_v10 = vld [vmem:[#allocation2 + $0x1e0] ss:$200 sps:$4 sm:$0x1f]   ;;  %v923_v13 = vand.u32 %v2524_v6, %v2667_v7 }
  0x29   :  { %1170 = vmatpush1.bf16.msra.mxu0 %v878_v41  ;;  %v2516_v9 = vld [vmem:[#allocation2 + $0x58] ss:$200 sps:$4 sm:$0xff]   ;;  %v2522_v11 = vld [vmem:[#allocation2 + $0x1e8] ss:$200 sps:$4 sm:$0x1f]   ;;  %v914_v14 = vand.u32 %v2519_v10, %v2667_v7 }
  0x2a   :  { %1211 = vmatpush1.bf16.msra.mxu1 %v884_v42  ;;  %1249 = vmatprep.subr.bf16.mxu0 %v2491_v40  ;;  %v920_v15 = vand.u32 %v2522_v11, %v2667_v7  ;;  %v2527_v16 = vld [vmem:[#allocation2 + $0x64] ss:$200 sps:$4 sm:$0xff]   ;;  %v2533_v17 = vld [vmem:[#allocation2 + $0x1f4] ss:$200 sps:$4 sm:$0x1f]  }
  0x2b   :  { %1290 = vmatprep.subr.bf16.mxu1 %v2494_v43  ;;  %v2530_v18 = vld [vmem:[#allocation2 + $0x6c] ss:$200 sps:$4 sm:$0xff]   ;;  %v2536_v20 = vld [vmem:[#allocation2 + $0x1fc] ss:$200 sps:$4 sm:$0x1f]   ;;  %v929_v25 = vand.u32 %v2533_v17, %v2667_v7 }
  0x2c   :  { %2425 = vmatmul.mubr.msk.bf16.vlgmr.msra.gmra.mrb[8].mxu0 %vm845_vm2, %v2676_v19  ;;  %v2525_v21 = vld [vmem:[#allocation2 + $0x60] ss:$200 sps:$4 sm:$0xff]   ;;  %v2531_v23 = vld [vmem:[#allocation2 + $0x1f0] ss:$200 sps:$4 sm:$0x1f]   ;;  %v935_v26 = vand.u32 %v2536_v20, %v2667_v7 }
  0x2d   :  { %2426 = vmatmul.mubr.msk.bf16.vlgmr.msra.gmra.mrb[8].mxu1 %vm845_vm2, %v2676_v19  ;;  %1250 = vmatpush1.bf16.msra.mxu0 %v2489_v46  ;;  %v2528_v22 = vld [vmem:[#allocation2 + $0x68] ss:$200 sps:$4 sm:$0xff]   ;;  %v2534_v24 = vld [vmem:[#allocation2 + $0x1f8] ss:$200 sps:$4 sm:$0x1f]   ;;  %v926_v28 = vand.u32 %v2531_v23, %v2667_v7 }
  0x2e   :  { %1291 = vmatpush1.bf16.msra.mxu1 %v2492_v48  ;;  %1251 = vmatprep.subr.bf16.mxu0 %v893_v50  ;;  %v2539_v27 = vld [vmem:[#allocation2 + $0x74] ss:$200 sps:$4 sm:$0xff]   ;;  %v932_v29 = vand.u32 %v2534_v24, %v2667_v7  ;;  %v2545_v31 = vld [vmem:[#allocation2 + $0x204] ss:$200 sps:$4 sm:$0x1f]  }
  0x2f   :  { %1292 = vmatprep.subr.bf16.mxu1 %v899_v51  ;;  %1281 = vmatprep.mubr.bf16.mxu0 %v2630_v0  ;;  %v2542_v30 = vld [vmem:[#allocation2 + $0x7c] ss:$200 sps:$4 sm:$0xff]   ;;  %v2548_v32 = vld [vmem:[#allocation2 + $0x20c] ss:$200 sps:$4 sm:$0x1f]   ;;  %v941_v37 = vand.u32 %v2545_v31, %v2667_v7 }
  0x30   :  { %1322 = vmatprep.mubr.bf16.mxu1 %v2630_v0  ;;  %v2537_v33 = vld [vmem:[#allocation2 + $0x70] ss:$200 sps:$4 sm:$0xff]   ;;  %v2543_v35 = vld [vmem:[#allocation2 + $0x200] ss:$200 sps:$4 sm:$0x1f]   ;;  %v947_v38 = vand.u32 %v2548_v32, %v2667_v7 }
  0x31   :  { %1252 = vmatpush1.bf16.msra.mxu0 %v890_v53  ;;  %v2540_v34 = vld [vmem:[#allocation2 + $0x78] ss:$200 sps:$4 sm:$0xff]   ;;  %v2546_v36 = vld [vmem:[#allocation2 + $0x208] ss:$200 sps:$4 sm:$0x1f]   ;;  %v938_v40 = vand.u32 %v2543_v35, %v2667_v7 }
  0x32   :  { %1293 = vmatpush1.bf16.msra.mxu1 %v896_v54  ;;  %1331 = vmatprep.subr.bf16.mxu0 %v2503_v52  ;;  %v2551_v39 = vld [vmem:[#allocation2 + $0x84] ss:$200 sps:$4 sm:$0xff]   ;;  %v944_v41 = vand.u32 %v2546_v36, %v2667_v7  ;;  %v2557_v43 = vld [vmem:[#allocation2 + $0x214] ss:$200 sps:$4 sm:$0x1f]  }
  0x33   :  { %1372 = vmatprep.subr.bf16.mxu1 %v2506_v55  ;;  %v2554_v42 = vld [vmem:[#allocation2 + $0x8c] ss:$200 sps:$4 sm:$0xff]   ;;  %v2560_v44 = vld [vmem:[#allocation2 + $0x21c] ss:$200 sps:$4 sm:$0x1f]   ;;  %v953_v49 = vand.u32 %v2557_v43, %v2667_v7 }
  0x34   :  { %2427 = vmatmul.mubr.msk.bf16.vlgmr.msra.gmra.mrb[12].mxu0 %vm845_vm2, %v2676_v19  ;;  %v2549_v45 = vld [vmem:[#allocation2 + $0x80] ss:$200 sps:$4 sm:$0xff]   ;;  %v2555_v47 = vld [vmem:[#allocation2 + $0x210] ss:$200 sps:$4 sm:$0x1f]   ;;  %v959_v50 = vand.u32 %v2560_v44, %v2667_v7 }
  0x35   :  { %2428 = vmatmul.mubr.msk.bf16.vlgmr.msra.gmra.mrb[12].mxu1 %vm845_vm2, %v2676_v19  ;;  %1332 = vmatpush1.bf16.msra.mxu0 %v2501_v58  ;;  %v2552_v46 = vld [vmem:[#allocation2 + $0x88] ss:$200 sps:$4 sm:$0xff]   ;;  %v2558_v48 = vld [vmem:[#allocation2 + $0x218] ss:$200 sps:$4 sm:$0x1f]   ;;  %v950_v52 = vand.u32 %v2555_v47, %v2667_v7 }
  0x36   :  { %1373 = vmatpush1.bf16.msra.mxu1 %v2504_v59  ;;  %1333 = vmatprep.subr.bf16.mxu0 %v905_v62  ;;  %v2563_v51 = vld [vmem:[#allocation2 + $0x94] ss:$200 sps:$4 sm:$0xff]   ;;  %v956_v53 = vand.u32 %v2558_v48, %v2667_v7  ;;  %v2569_v55 = vld [vmem:[#allocation2 + $0x224] ss:$200 sps:$4 sm:$0x1f]  }
  0x37   :  { %1374 = vmatprep.subr.bf16.mxu1 %v911_v63  ;;  %1363 = vmatprep.mubr.bf16.mxu0 %v2630_v0  ;;  %v2566_v54 = vld [vmem:[#allocation2 + $0x9c] ss:$200 sps:$4 sm:$0xff]   ;;  %v2572_v56 = vld [vmem:[#allocation2 + $0x22c] ss:$200 sps:$4 sm:$0x1f]   ;;  %v965_v61 = vand.u32 %v2569_v55, %v2667_v7 }
  0x38   :  { %1404 = vmatprep.mubr.bf16.mxu1 %v2630_v0  ;;  %v2561_v57 = vld [vmem:[#allocation2 + $0x90] ss:$200 sps:$4 sm:$0xff]   ;;  %v2567_v59 = vld [vmem:[#allocation2 + $0x220] ss:$200 sps:$4 sm:$0x1f]   ;;  %v971_v62 = vand.u32 %v2572_v56, %v2667_v7 }
  0x39   :  { %1334 = vmatpush1.bf16.msra.mxu0 %v902_v3  ;;  %v2564_v58 = vld [vmem:[#allocation2 + $0x98] ss:$200 sps:$4 sm:$0xff]   ;;  %v2570_v60 = vld [vmem:[#allocation2 + $0x228] ss:$200 sps:$4 sm:$0x1f]   ;;  %v962_v63 = vand.u32 %v2567_v59, %v2667_v7 }
  0x3a   :  { %1375 = vmatpush1.bf16.msra.mxu1 %v908_v4  ;;  %1413 = vmatprep.subr.bf16.mxu0 %v2515_v1  ;;  %v968_v1 = vand.u32 %v2570_v60, %v2667_v7  ;;  %v2578_v3 = vld [vmem:[#allocation2 + $0xac] ss:$200 sps:$4 sm:$0xff]   ;;  %v2584_v5 = vld [vmem:[#allocation2 + $0x23c] ss:$200 sps:$4 sm:$0x1f]  }
  0x3b   :  { %1454 = vmatprep.subr.bf16.mxu1 %v2518_v2  ;;  %v2575_v2 = vld [vmem:[#allocation2 + $0xa4] ss:$200 sps:$4 sm:$0xff]   ;;  %v2581_v4 = vld [vmem:[#allocation2 + $0x234] ss:$200 sps:$4 sm:$0x1f]  }
  0x3c   :  { %2429 = vmatmul.mubr.msk.bf16.vlgmr.msra.gmra.mrb[16].mxu0 %vm845_vm2, %v2676_v19  ;;  %v2573_v6 = vld [vmem:[#allocation2 + $0xa0] ss:$200 sps:$4 sm:$0xff]   ;;  %v977_v11 = vand.u32 %v2581_v4, %v2667_v7  ;;  %v2593_v17 = vld [vmem:[#allocation2 + $0x244] ss:$200 sps:$4 sm:$0x1f]  }
  0x3d   :  { %2430 = vmatmul.mubr.msk.bf16.vlgmr.msra.gmra.mrb[16].mxu1 %vm845_vm2, %v2676_v19  ;;  %1414 = vmatpush1.bf16.msra.mxu0 %v2513_v8  ;;  %v2576_v8 = vld [vmem:[#allocation2 + $0xa8] ss:$200 sps:$4 sm:$0xff]   ;;  %v2582_v10 = vld [vmem:[#allocation2 + $0x238] ss:$200 sps:$4 sm:$0x1f]   ;;  %v989_v24 = vand.u32 %v2593_v17, %v2667_v7 }
  0x3e   :  { %1455 = vmatpush1.bf16.msra.mxu1 %v2516_v9  ;;  %1415 = vmatprep.subr.bf16.mxu0 %v917_v12  ;;  %v2579_v9 = vld [vmem:[#allocation2 + $0x230] ss:$200 sps:$4 sm:$0x1f]   ;;  %v983_v12 = vand.u32 %v2584_v5, %v2667_v7  ;;  %v2632_v36 = vmov 1983009808  }
  0x3f   :  { %1456 = vmatprep.subr.bf16.mxu1 %v923_v13  ;;  %1445 = vmatprep.mubr.bf16.mxu0 %v2630_v0  ;;  %v974_v13 = vand.u32 %v2579_v9, %v2667_v7  ;;  %v2585_v20 = vld [vmem:[#allocation2 + $0xb0] ss:$200 sps:$4 sm:$0xff]  }
  0x40   :  { %1486 = vmatprep.mubr.bf16.mxu1 %v2630_v0  ;;  %v2594_v23 = vld [vmem:[#allocation2 + $0x248] ss:$200 sps:$4 sm:$0x1f]  }
  0x41   :  { %1416 = vmatpush1.bf16.msra.mxu0 %v914_v14  ;;  %v980_v14 = vand.u32 %v2582_v10, %v2667_v7  ;;  %v2600_v31 = vld [vmem:[#allocation2 + $0x250] ss:$200 sps:$4 sm:$0x1f]  }
  0x42   :  { %1457 = vmatpush1.bf16.msra.mxu1 %v920_v15  ;;  %1495 = vmatprep.subr.bf16.mxu0 %v2527_v16  ;;  %v2587_v15 = vld [vmem:[#allocation2 + $0xb4] ss:$200 sps:$4 sm:$0xff]  }
  0x43   :  { %1536 = vmatprep.subr.bf16.mxu1 %v2530_v18  ;;  %v2590_v16 = vld [vmem:[#allocation2 + $0xbc] ss:$200 sps:$4 sm:$0xff]   ;;  %v2596_v18 = vld [vmem:[#allocation2 + $0x24c] ss:$200 sps:$4 sm:$0x1f]  }
  0x44   :  { %2431 = vmatmul.mubr.msk.bf16.vlgmr.msra.gmra.mrb[20].mxu0 %vm845_vm2, %v2676_v19 }
  0x45   :  { %2432 = vmatmul.mubr.msk.bf16.vlgmr.msra.gmra.mrb[20].mxu1 %vm845_vm2, %v2676_v19  ;;  %1496 = vmatpush1.bf16.msra.mxu0 %v2525_v21  ;;  %v2588_v21 = vld [vmem:[#allocation2 + $0xb8] ss:$200 sps:$4 sm:$0xff]  }
  0x46   :  { %1537 = vmatpush1.bf16.msra.mxu1 %v2528_v22  ;;  %1497 = vmatprep.subr.bf16.mxu0 %v929_v25  ;;  %v2591_v22 = vld [vmem:[#allocation2 + $0x240] ss:$200 sps:$4 sm:$0x1f]   ;;  %v995_v25 = vand.u32 %v2596_v18, %v2667_v7 }
  0x47   :  { %1538 = vmatprep.subr.bf16.mxu1 %v935_v26  ;;  %1527 = vmatprep.mubr.bf16.mxu0 %v2630_v0  ;;  %v986_v26 = vand.u32 %v2591_v22, %v2667_v7 }
  0x48   :  { %1568 = vmatprep.mubr.bf16.mxu1 %v2630_v0 }
  0x49   :  { %1498 = vmatpush1.bf16.msra.mxu0 %v926_v28  ;;  %v2599_v28 = vld [vmem:[#allocation2 + $0xc4] ss:$200 sps:$4 sm:$0xff]  }
  0x4a   :  { %1539 = vmatpush1.bf16.msra.mxu1 %v932_v29  ;;  %1577 = vmatprep.subr.bf16.mxu0 %v2539_v27  ;;  %v992_v27 = vand.u32 %v2594_v23, %v2667_v7  ;;  %v2602_v29 = vld [vmem:[#allocation2 + $0x254] ss:$200 sps:$4 sm:$0x1f]  }
  0x4b   :  { %1618 = vmatprep.subr.bf16.mxu1 %v2542_v30  ;;  %v2597_v30 = vld [vmem:[#allocation2 + $0xc0] ss:$200 sps:$4 sm:$0xff]   ;;  %v1001_v32 = vand.u32 %v2602_v29, %v2667_v7 }
  0x4c   :  { %2433 = vmatmul.mubr.msk.bf16.vlgmr.msra.gmra.mrb[24].mxu0 %vm845_vm2, %v2676_v19 }
  0x4d   :  { %2434 = vmatmul.mubr.msk.bf16.vlgmr.msra.gmra.mrb[24].mxu1 %vm845_vm2, %v2676_v19  ;;  %1578 = vmatpush1.bf16.msra.mxu0 %v2537_v33  ;;  %v998_v33 = vand.u32 %v2600_v31, %v2667_v7 }
  0x4e   :  { %1619 = vmatpush1.bf16.msra.mxu1 %v2540_v34  ;;  %1579 = vmatprep.subr.bf16.mxu0 %v941_v37  ;;  %v145_v34 = vlaneseq  ;;  %v2081_v37 = vunpack.c.l.s4 %v2632_v36 }
  0x4f   :  { %1620 = vmatprep.subr.bf16.mxu1 %v947_v38  ;;  %1609 = vmatprep.mubr.bf16.mxu0 %v2630_v0 }
  0x50   :  { %1650 = vmatprep.mubr.bf16.mxu1 %v2630_v0  ;;  %v146_v35 = vshrl.u32 %v145_v34, 7 }
  0x51   :  { %1580 = vmatpush1.bf16.msra.mxu0 %v938_v40  ;;  %v131_v40 = vld [vmem:[%s2951_s2] sm:$0xff] }
  0x52   :  { %1621 = vmatpush1.bf16.msra.mxu1 %v944_v41  ;;  %1659 = vmatprep.subr.bf16.mxu0 %v2551_v39  ;;  %v2797_v38 = vsub.s32 0, %v146_v35  ;;  %v2799_v39 = vsub.s32 2, %v146_v35  ;;  %v2804_v7 = vsub.s32 1, %v146_v35  ;;  %v2082_v41 = vunpack.c.0.s8 %v2081_v37 }
  0x53   :  { %1700 = vmatprep.subr.bf16.mxu1 %v2554_v42  ;;  %v2820_v59 = vsub.s32 7, %v146_v35 }
  0x54   :  { %2435 = vmatmul.mubr.msk.bf16.vlgmr.msra.gmra.mrb[28].mxu0 %vm845_vm2, %v2676_v19  ;;  %v148_v42 = vrot.slane %v131_v40, %v2797_v38  ;;  %v152_v43 = vrot.slane %v131_v40, %v2804_v7  ;;  %v2812_v47 = vsub.s32 %v2082_v41, %v146_v35 }
  0x55   :  { %2436 = vmatmul.mubr.msk.bf16.vlgmr.msra.gmra.mrb[28].mxu1 %vm845_vm2, %v2676_v19  ;;  %1660 = vmatpush1.bf16.msra.mxu0 %v2549_v45 }
  0x56   :  { %1701 = vmatpush1.bf16.msra.mxu1 %v2552_v46  ;;  %1661 = vmatprep.subr.bf16.mxu0 %v953_v49 }
  0x57   :  { %1702 = vmatprep.subr.bf16.mxu1 %v959_v50  ;;  %1691 = vmatprep.mubr.bf16.mxu0 %v2630_v0 }
  0x58   :  { %1732 = vmatprep.mubr.bf16.mxu1 %v2630_v0 }
  0x59   :  { %1662 = vmatpush1.bf16.msra.mxu0 %v950_v52  ;;  %v2814_v52 = vsub.s32 4, %v146_v35 }
  0x5a   :  { %1703 = vmatpush1.bf16.msra.mxu1 %v956_v53  ;;  %1741 = vmatprep.subr.bf16.mxu0 %v2563_v51  ;;  %v2816_v53 = vsub.s32 6, %v146_v35 }
  0x5b   :  { %1782 = vmatprep.subr.bf16.mxu1 %v2566_v54 }
  0x5c   :  { %2437 = vmatmul.mubr.msk.bf16.vlgmr.msra.gmra.mrb[32].mxu0 %vm845_vm2, %v2676_v19 }
  0x5d   :  { %2438 = vmatmul.mubr.msk.bf16.vlgmr.msra.gmra.mrb[32].mxu1 %vm845_vm2, %v2676_v19  ;;  %1742 = vmatpush1.bf16.msra.mxu0 %v2561_v57 }
  0x5e   :  { %1783 = vmatpush1.bf16.msra.mxu1 %v2564_v58  ;;  %1743 = vmatprep.subr.bf16.mxu0 %v965_v61  ;;  %v2818_v58 = vsub.s32 5, %v146_v35 }
  0x5f   :  { %1784 = vmatprep.subr.bf16.mxu1 %v971_v62  ;;  %1773 = vmatprep.mubr.bf16.mxu0 %v2630_v0 }
  0x60   :  { %1814 = vmatprep.mubr.bf16.mxu1 %v2630_v0  ;;  %v168_v5 = vrot.slane %v131_v40, %v2818_v58 }
  0x61   :  { %1744 = vmatpush1.bf16.msra.mxu0 %v962_v63 }
  0x62   :  { %1785 = vmatpush1.bf16.msra.mxu1 %v968_v1  ;;  %1823 = vmatprep.subr.bf16.mxu0 %v2575_v2  ;;  %v164_v1 = vrot.slane %v131_v40, %v2814_v52  ;;  %v172_v2 = vrot.slane %v131_v40, %v2816_v53 }
  0x63   :  { %1864 = vmatprep.subr.bf16.mxu1 %v2578_v3 }
  0x64   :  { %2439 = vmatmul.mubr.msk.bf16.vlgmr.msra.gmra.mrb[36].mxu0 %vm845_vm2, %v2676_v19 }
  0x65   :  { %2440 = vmatmul.mubr.msk.bf16.vlgmr.msra.gmra.mrb[36].mxu1 %vm845_vm2, %v2676_v19  ;;  %1824 = vmatpush1.bf16.msra.mxu0 %v2573_v6  ;;  %v176_v6 = vrot.slane %v131_v40, %v2820_v59 }
  0x66   :  { %1865 = vmatpush1.bf16.msra.mxu1 %v2576_v8  ;;  %1825 = vmatprep.subr.bf16.mxu0 %v977_v11 }
  0x67   :  { %1866 = vmatprep.subr.bf16.mxu1 %v983_v12  ;;  %1855 = vmatprep.mubr.bf16.mxu0 %v2630_v0 }
  0x68   :  { %1896 = vmatprep.mubr.bf16.mxu1 %v2630_v0 }
  0x69   :  { %1826 = vmatpush1.bf16.msra.mxu0 %v974_v13 }
  0x6a   :  { %1867 = vmatpush1.bf16.msra.mxu1 %v980_v14  ;;  %1905 = vmatprep.subr.bf16.mxu0 %v2587_v15 }
  0x6b   :  { %1946 = vmatprep.subr.bf16.mxu1 %v2590_v16 }
  0x6c   :  { %2441 = vmatmul.mubr.msk.bf16.vlgmr.msra.gmra.mrb[40].mxu0 %vm845_vm2, %v2676_v19 }
  0x6d   :  { %2442 = vmatmul.mubr.msk.bf16.vlgmr.msra.gmra.mrb[40].mxu1 %vm845_vm2, %v2676_v19  ;;  %1906 = vmatpush1.bf16.msra.mxu0 %v2585_v20  ;;  %v132_v20 = vld [vmem:[%s2951_s2 + $0x8] sm:$0xff] }
  0x6e   :  { %1947 = vmatpush1.bf16.msra.mxu1 %v2588_v21  ;;  %1907 = vmatprep.subr.bf16.mxu0 %v989_v24  ;;  %v184_v29 = vrot.slane %v132_v20, %v2804_v7 }
  0x6f   :  { %1948 = vmatprep.subr.bf16.mxu1 %v995_v25  ;;  %1937 = vmatprep.mubr.bf16.mxu0 %v2630_v0  ;;  %v180_v25 = vrot.slane %v132_v20, %v2797_v38 }
  0x70   :  { %1978 = vmatprep.mubr.bf16.mxu1 %v2630_v0 }
  0x71   :  { %1908 = vmatpush1.bf16.msra.mxu0 %v986_v26  ;;  %v188_v26 = vrot.slane %v132_v20, %v2799_v39 }
  0x72   :  { %1949 = vmatpush1.bf16.msra.mxu1 %v992_v27  ;;  %1987 = vmatprep.subr.bf16.mxu0 %v2599_v28 }
  0x74   :  { %2443 = vmatmul.mubr.msk.bf16.vlgmr.msra.gmra.mrb[44].mxu0 %vm845_vm2, %v2676_v19 }
  0x75   :  { %2444 = vmatmul.mubr.msk.bf16.vlgmr.msra.gmra.mrb[44].mxu1 %vm845_vm2, %v2676_v19  ;;  %1988 = vmatpush1.bf16.msra.mxu0 %v2597_v30 }
  0x76   :  { %2019 = vmatprep.mubr.bf16.mxu0 %v2630_v0  ;;  %1989 = vmatprep.subr.bf16.mxu0 %v1001_v32  ;;  %v2806_v0 = vsub.s32 3, %v146_v35 }
  0x78   :  { %v160_v44 = vrot.slane %v131_v40, %v2806_v0  ;;  %v192_v30 = vrot.slane %v132_v20, %v2806_v0 }
  0x79   :  { %1990 = vmatpush1.bf16.msra.mxu0 %v998_v33 }
  0x7c   :  { %2445 = vmatmul.mubr.msk.bf16.vlgmr.msra.gmra.mrb[48].mxu0 %vm845_vm2, %v2676_v19  ;;  %v156_v19 = vrot.slane %v131_v40, %v2799_v39 }
  0xef   :  { %v1037_v45 = vpop.f32.mrb[0].mxu0 }
  0xf0   :  { %v1078_v46 = vpop.f32.mrb[0].mxu1  ;;  %v1038_v48 = vadd.f32 %v1037_v45, %v148_v42  ;;  %v1039_v50 = vpop.f32.mrb[1].mxu0 }
  0xf1   :  { %v1079_v49 = vadd.f32 %v1078_v46, %v156_v19  ;;  %v1080_v51 = vpop.f32.mrb[1].mxu1  ;;  %v1040_v54 = vadd.f32 %v1039_v50, %v152_v43  ;;  %v1041_v56 = vpop.f32.mrb[2].mxu0 }
  0xf2   :  { %v1081_v55 = vadd.f32 %v1080_v51, %v160_v44  ;;  %v1082_v57 = vpop.f32.mrb[2].mxu1  ;;  %v1042_v60 = vpop.f32.mrb[3].mxu0 }
  0xf3   :  { %v1083_v61 = vpop.f32.mrb[3].mxu1  ;;  %v2078_v62 = vcombine.low %v1038_v48, %v1040_v54  ;;  %v196_v48 = vrot.slane %v132_v20, %v2814_v52  ;;  %v200_v54 = vrot.slane %v132_v20, %v2818_v58 }
  0xf4   :  { %v2079_v63 = vcombine.low %v1079_v49, %v1081_v55  ;;  %v204_v49 = vrot.slane %v132_v20, %v2816_v53  ;;  %v208_v55 = vrot.slane %v132_v20, %v2820_v59 }
  0xf5   :  { %v2086_v3 = vrot.slane %v2078_v62, %v2812_v47 }
  0xf6   :  { %v2093_v4 = vrot.slane %v2079_v63, %v2812_v47 }
  0xf7   :  { %v1119_v9 = vpop.f32.mrb[4].mxu0 }
  0xf8   :  { %v2094_v8 = vcombine.low %v2086_v3, %v2093_v4  ;;  %v1160_v10 = vpop.f32.mrb[4].mxu1  ;;  %v1120_v11 = vadd.f32 %v1119_v9, %v164_v1  ;;  %v1121_v13 = vpop.f32.mrb[5].mxu0 }
  0xf9   :  { %v1161_v12 = vadd.f32 %v1160_v10, %v172_v2  ;;  %v1162_v14 = vpop.f32.mrb[5].mxu1  ;;  %v1122_v15 = vadd.f32 %v1121_v13, %v168_v5  ;;  %v1123_v17 = vpop.f32.mrb[6].mxu0 }
  0xfa   :  { %2303 = vst [vmem:[%s2952_s3] sm:$0xff] %v2094_v8  ;;  %v1163_v16 = vadd.f32 %v1162_v14, %v176_v6  ;;  %v1164_v18 = vpop.f32.mrb[6].mxu1  ;;  %v1124_v21 = vpop.f32.mrb[7].mxu0  ;;  %v133_v6 = vld [vmem:[%s2951_s2 + $0x10] sm:$0xff] }
  0xfb   :  { %v1165_v22 = vpop.f32.mrb[7].mxu1  ;;  %v2095_v23 = vcombine.low %v1120_v11, %v1122_v15  ;;  %v220_v13 = vrot.slane %v133_v6, %v2799_v39  ;;  %v224_v17 = vrot.slane %v133_v6, %v2806_v0 }
  0xfc   :  { %v2096_v24 = vcombine.low %v1161_v12, %v1163_v16  ;;  %v212_v12 = vrot.slane %v133_v6, %v2797_v38  ;;  %v216_v16 = vrot.slane %v133_v6, %v2804_v7 }
  0xfd   :  { %v2103_v27 = vrot.slane %v2095_v23, %v2812_v47 }
  0xfe   :  { %v2110_v28 = vrot.slane %v2096_v24, %v2812_v47 }
  0xff   :  { %v1201_v32 = vpop.f32.mrb[8].mxu0 }
 0x100   :  { %v2111_v31 = vcombine.low %v2103_v27, %v2110_v28  ;;  %v1242_v33 = vpop.f32.mrb[8].mxu1  ;;  %v1202_v34 = vadd.f32 %v1201_v32, %v180_v25  ;;  %v1203_v36 = vpop.f32.mrb[9].mxu0 }
 0x101   :  { %v1243_v35 = vadd.f32 %v1242_v33, %v188_v26  ;;  %v1244_v37 = vpop.f32.mrb[9].mxu1  ;;  %v1204_v40 = vadd.f32 %v1203_v36, %v184_v29  ;;  %v1205_v42 = vpop.f32.mrb[10].mxu0 }
 0x102   :  { %2304 = vst [vmem:[%s2952_s3 + $0x8] sm:$0xff] %v2111_v31  ;;  %v1245_v41 = vadd.f32 %v1244_v37, %v192_v30  ;;  %v1246_v19 = vpop.f32.mrb[10].mxu1  ;;  %v1206_v43 = vpop.f32.mrb[11].mxu0 }
 0x103   :  { %v1247_v44 = vpop.f32.mrb[11].mxu1  ;;  %v2112_v45 = vcombine.low %v1202_v34, %v1204_v40  ;;  %v228_v34 = vrot.slane %v133_v6, %v2814_v52  ;;  %v232_v40 = vrot.slane %v133_v6, %v2818_v58 }
 0x104   :  { %v2113_v46 = vcombine.low %v1243_v35, %v1245_v41  ;;  %v236_v35 = vrot.slane %v133_v6, %v2816_v53  ;;  %v240_v41 = vrot.slane %v133_v6, %v2820_v59 }
 0x105   :  { %v2120_v50 = vrot.slane %v2112_v45, %v2812_v47 }
 0x106   :  { %v2127_v51 = vrot.slane %v2113_v46, %v2812_v47 }
 0x107   :  { %v1283_v57 = vpop.f32.mrb[12].mxu0 }
 0x108   :  { %v2128_v56 = vcombine.low %v2120_v50, %v2127_v51  ;;  %v1324_v60 = vpop.f32.mrb[12].mxu1  ;;  %v1284_v61 = vadd.f32 %v1283_v57, %v196_v48  ;;  %v1285_v63 = vpop.f32.mrb[13].mxu0 }
 0x109   :  { %v1325_v62 = vadd.f32 %v1324_v60, %v204_v49  ;;  %v1326_v1 = vpop.f32.mrb[13].mxu1  ;;  %v1286_v2 = vadd.f32 %v1285_v63, %v200_v54  ;;  %v1287_v4 = vpop.f32.mrb[14].mxu0 }
 0x10a   :  { %2305 = vst [vmem:[%s2952_s3 + $0x10] sm:$0xff] %v2128_v56  ;;  %v1327_v3 = vadd.f32 %v1326_v1, %v208_v55  ;;  %v1328_v5 = vpop.f32.mrb[14].mxu1  ;;  %v1288_v8 = vpop.f32.mrb[15].mxu0  ;;  %v134_v55 = vld [vmem:[%s2951_s2 + $0x18] sm:$0xff] }
 0x10b   :  { %v1329_v9 = vpop.f32.mrb[15].mxu1  ;;  %v2129_v10 = vcombine.low %v1284_v61, %v1286_v2  ;;  %v252_v63 = vrot.slane %v134_v55, %v2799_v39  ;;  %v256_v4 = vrot.slane %v134_v55, %v2806_v0 }
 0x10c   :  { %v2130_v11 = vcombine.low %v1325_v62, %v1327_v3  ;;  %v244_v62 = vrot.slane %v134_v55, %v2797_v38  ;;  %v248_v3 = vrot.slane %v134_v55, %v2804_v7 }
 0x10d   :  { %v2137_v14 = vrot.slane %v2129_v10, %v2812_v47 }
 0x10e   :  { %v2144_v15 = vrot.slane %v2130_v11, %v2812_v47 }
 0x10f   :  { %v1365_v20 = vpop.f32.mrb[16].mxu0 }
 0x110   :  { %v2145_v18 = vcombine.low %v2137_v14, %v2144_v15  ;;  %v1406_v21 = vpop.f32.mrb[16].mxu1  ;;  %v1366_v22 = vadd.f32 %v1365_v20, %v212_v12  ;;  %v1367_v24 = vpop.f32.mrb[17].mxu0 }
 0x111   :  { %v1407_v23 = vadd.f32 %v1406_v21, %v220_v13  ;;  %v1408_v25 = vpop.f32.mrb[17].mxu1  ;;  %v1368_v26 = vadd.f32 %v1367_v24, %v216_v16  ;;  %v1369_v28 = vpop.f32.mrb[18].mxu0 }
 0x112   :  { %2306 = vst [vmem:[%s2952_s3 + $0x18] sm:$0xff] %v2145_v18  ;;  %v1409_v27 = vadd.f32 %v1408_v25, %v224_v17  ;;  %v1410_v29 = vpop.f32.mrb[18].mxu1  ;;  %v1370_v30 = vpop.f32.mrb[19].mxu0 }
 0x113   :  { %v1411_v31 = vpop.f32.mrb[19].mxu1  ;;  %v2146_v32 = vcombine.low %v1366_v22, %v1368_v26  ;;  %v260_v22 = vrot.slane %v134_v55, %v2814_v52  ;;  %v264_v26 = vrot.slane %v134_v55, %v2818_v58 }
 0x114   :  { %v2147_v33 = vcombine.low %v1407_v23, %v1409_v27  ;;  %v268_v23 = vrot.slane %v134_v55, %v2816_v53  ;;  %v272_v27 = vrot.slane %v134_v55, %v2820_v59 }
 0x115   :  { %v2154_v36 = vrot.slane %v2146_v32, %v2812_v47 }
 0x116   :  { %v2161_v37 = vrot.slane %v2147_v33, %v2812_v47 }
 0x117   :  { %v1447_v19 = vpop.f32.mrb[20].mxu0 }
 0x118   :  { %v2162_v42 = vcombine.low %v2154_v36, %v2161_v37  ;;  %v1488_v43 = vpop.f32.mrb[20].mxu1  ;;  %v1448_v44 = vadd.f32 %v1447_v19, %v228_v34  ;;  %v1449_v46 = vpop.f32.mrb[21].mxu0 }
 0x119   :  { %v1489_v45 = vadd.f32 %v1488_v43, %v236_v35  ;;  %v1490_v48 = vpop.f32.mrb[21].mxu1  ;;  %v1450_v49 = vadd.f32 %v1449_v46, %v232_v40  ;;  %v1451_v51 = vpop.f32.mrb[22].mxu0 }
 0x11a   :  { %2307 = vst [vmem:[%s2952_s3 + $0x20] sm:$0xff] %v2162_v42  ;;  %v1491_v50 = vadd.f32 %v1490_v48, %v240_v41  ;;  %v1492_v54 = vpop.f32.mrb[22].mxu1  ;;  %v1452_v56 = vpop.f32.mrb[23].mxu0  ;;  %v135_v41 = vld [vmem:[%s2951_s2 + $0x20] sm:$0xff] }
 0x11b   :  { %v1493_v57 = vpop.f32.mrb[23].mxu1  ;;  %v2163_v60 = vcombine.low %v1448_v44, %v1450_v49  ;;  %v284_v46 = vrot.slane %v135_v41, %v2799_v39  ;;  %v288_v51 = vrot.slane %v135_v41, %v2806_v0 }
 0x11c   :  { %v2164_v61 = vcombine.low %v1489_v45, %v1491_v50  ;;  %v276_v45 = vrot.slane %v135_v41, %v2797_v38  ;;  %v280_v50 = vrot.slane %v135_v41, %v2804_v7 }
 0x11d   :  { %v2171_v1 = vrot.slane %v2163_v60, %v2812_v47 }
 0x11e   :  { %v2178_v2 = vrot.slane %v2164_v61, %v2812_v47 }
 0x11f   :  { %v1529_v6 = vpop.f32.mrb[24].mxu0 }
 0x120   :  { %v2179_v5 = vcombine.low %v2171_v1, %v2178_v2  ;;  %v1570_v8 = vpop.f32.mrb[24].mxu1  ;;  %v1530_v9 = vadd.f32 %v1529_v6, %v244_v62  ;;  %v1531_v11 = vpop.f32.mrb[25].mxu0 }
 0x121   :  { %v1571_v10 = vadd.f32 %v1570_v8, %v252_v63  ;;  %v1572_v12 = vpop.f32.mrb[25].mxu1  ;;  %v1532_v13 = vadd.f32 %v1531_v11, %v248_v3  ;;  %v1533_v15 = vpop.f32.mrb[26].mxu0 }
 0x122   :  { %2308 = vst [vmem:[%s2952_s3 + $0x28] sm:$0xff] %v2179_v5  ;;  %v1573_v14 = vadd.f32 %v1572_v12, %v256_v4  ;;  %v1574_v16 = vpop.f32.mrb[26].mxu1  ;;  %v1534_v17 = vpop.f32.mrb[27].mxu0 }
 0x123   :  { %v1575_v18 = vpop.f32.mrb[27].mxu1  ;;  %v2180_v20 = vcombine.low %v1530_v9, %v1532_v13  ;;  %v292_v9 = vrot.slane %v135_v41, %v2814_v52  ;;  %v296_v13 = vrot.slane %v135_v41, %v2818_v58 }
 0x124   :  { %v2181_v21 = vcombine.low %v1571_v10, %v1573_v14  ;;  %v300_v10 = vrot.slane %v135_v41, %v2816_v53  ;;  %v304_v14 = vrot.slane %v135_v41, %v2820_v59 }
 0x125   :  { %v2188_v24 = vrot.slane %v2180_v20, %v2812_v47 }
 0x126   :  { %v2195_v25 = vrot.slane %v2181_v21, %v2812_v47 }
 0x127   :  { %v1611_v29 = vpop.f32.mrb[28].mxu0 }
 0x128   :  { %v2196_v28 = vcombine.low %v2188_v24, %v2195_v25  ;;  %v1652_v30 = vpop.f32.mrb[28].mxu1  ;;  %v1612_v31 = vadd.f32 %v1611_v29, %v260_v22  ;;  %v1613_v33 = vpop.f32.mrb[29].mxu0 }
 0x129   :  { %v1653_v32 = vadd.f32 %v1652_v30, %v268_v23  ;;  %v1654_v34 = vpop.f32.mrb[29].mxu1  ;;  %v1614_v35 = vadd.f32 %v1613_v33, %v264_v26  ;;  %v1615_v37 = vpop.f32.mrb[30].mxu0 }
 0x12a   :  { %2309 = vst [vmem:[%s2952_s3 + $0x30] sm:$0xff] %v2196_v28  ;;  %v1655_v36 = vadd.f32 %v1654_v34, %v272_v27  ;;  %v1656_v40 = vpop.f32.mrb[30].mxu1  ;;  %v1616_v42 = vpop.f32.mrb[31].mxu0  ;;  %v136_v27 = vld [vmem:[%s2951_s2 + $0x28] sm:$0xff] }
 0x12b   :  { %v1657_v19 = vpop.f32.mrb[31].mxu1  ;;  %v2197_v43 = vcombine.low %v1612_v31, %v1614_v35  ;;  %v316_v33 = vrot.slane %v136_v27, %v2799_v39  ;;  %v320_v37 = vrot.slane %v136_v27, %v2806_v0  ;;  %v324_v0 = vrot.slane %v136_v27, %v2814_v52 }
 0x12c   :  { %v2198_v44 = vcombine.low %v1653_v32, %v1655_v36  ;;  %v308_v32 = vrot.slane %v136_v27, %v2797_v38  ;;  %v312_v36 = vrot.slane %v136_v27, %v2804_v7 }
 0x12d   :  { %v2205_v48 = vrot.slane %v2197_v43, %v2812_v47 }
 0x12e   :  { %v2212_v49 = vrot.slane %v2198_v44, %v2812_v47 }
 0x12f   :  { %v1693_v55 = vpop.f32.mrb[32].mxu0 }
 0x130   :  { %v2213_v54 = vcombine.low %v2205_v48, %v2212_v49  ;;  %v1734_v56 = vpop.f32.mrb[32].mxu1  ;;  %v1694_v57 = vadd.f32 %v1693_v55, %v276_v45  ;;  %v1695_v61 = vpop.f32.mrb[33].mxu0 }
 0x131   :  { %v1735_v60 = vadd.f32 %v1734_v56, %v284_v46  ;;  %v1736_v62 = vpop.f32.mrb[33].mxu1  ;;  %v1696_v63 = vadd.f32 %v1695_v61, %v280_v50  ;;  %v1697_v2 = vpop.f32.mrb[34].mxu0  ;;  %v332_v56 = vrot.slane %v136_v27, %v2816_v53  ;;  %v328_v61 = vrot.slane %v136_v27, %v2818_v58  ;;  %v137_v58 = vld [vmem:[%s2951_s2 + $0x30] sm:$0x3] }
 0x132   :  { %2310 = vst [vmem:[%s2952_s3 + $0x38] sm:$0xff] %v2213_v54  ;;  %v1737_v1 = vadd.f32 %v1736_v62, %v288_v51  ;;  %v1738_v3 = vpop.f32.mrb[34].mxu1  ;;  %v1698_v4 = vpop.f32.mrb[35].mxu0  ;;  %v336_v62 = vrot.slane %v136_v27, %v2820_v59 }
 0x133   :  { %v1739_v5 = vpop.f32.mrb[35].mxu1  ;;  %v2214_v6 = vcombine.low %v1694_v57, %v1696_v63 }
 0x134   :  { %v2215_v8 = vcombine.low %v1735_v60, %v1737_v1 }
 0x135   :  { %v2222_v11 = vrot.slane %v2214_v6, %v2812_v47 }
 0x136   :  { %v2229_v12 = vrot.slane %v2215_v8, %v2812_v47 }
 0x137   :  { %v1775_v16 = vpop.f32.mrb[36].mxu0 }
 0x138   :  { %v2230_v15 = vcombine.low %v2222_v11, %v2229_v12  ;;  %v1816_v17 = vpop.f32.mrb[36].mxu1  ;;  %v1776_v18 = vadd.f32 %v1775_v16, %v292_v9  ;;  %v1777_v21 = vpop.f32.mrb[37].mxu0  ;;  %v344_v16 = vrot.slane %v137_v58, %v2804_v7 }
 0x139   :  { %v1817_v20 = vadd.f32 %v1816_v17, %v300_v10  ;;  %v1818_v22 = vpop.f32.mrb[37].mxu1  ;;  %v1778_v23 = vadd.f32 %v1777_v21, %v296_v13  ;;  %v1779_v25 = vpop.f32.mrb[38].mxu0  ;;  %v340_v13 = vrot.slane %v137_v58, %v2797_v38 }
 0x13a   :  { %2311 = vst [vmem:[%s2952_s3 + $0x40] sm:$0xff] %v2230_v15  ;;  %v1819_v24 = vadd.f32 %v1818_v22, %v304_v14  ;;  %v1820_v26 = vpop.f32.mrb[38].mxu1  ;;  %v1780_v28 = vpop.f32.mrb[39].mxu0 }
 0x13b   :  { %v1821_v29 = vpop.f32.mrb[39].mxu1  ;;  %v2231_v30 = vcombine.low %v1776_v18, %v1778_v23 }
 0x13c   :  { %v2232_v31 = vcombine.low %v1817_v20, %v1819_v24 }
 0x13d   :  { %v2239_v34 = vrot.slane %v2231_v30, %v2812_v47 }
 0x13e   :  { %v2246_v35 = vrot.slane %v2232_v31, %v2812_v47 }
 0x13f   :  { %v1857_v41 = vpop.f32.mrb[40].mxu0 }
 0x140   :  { %v2247_v40 = vcombine.low %v2239_v34, %v2246_v35  ;;  %v1898_v42 = vpop.f32.mrb[40].mxu1  ;;  %v1858_v19 = vadd.f32 %v1857_v41, %v308_v32  ;;  %v1859_v44 = vpop.f32.mrb[41].mxu0 }
 0x141   :  { %v1899_v43 = vadd.f32 %v1898_v42, %v316_v33  ;;  %v1900_v45 = vpop.f32.mrb[41].mxu1  ;;  %v1860_v39 = vadd.f32 %v1859_v44, %v312_v36  ;;  %v1861_v48 = vpop.f32.mrb[42].mxu0 }
 0x142   :  { %2312 = vst [vmem:[%s2952_s3 + $0x48] sm:$0xff] %v2247_v40  ;;  %v1901_v46 = vadd.f32 %v1900_v45, %v320_v37  ;;  %v1902_v49 = vpop.f32.mrb[42].mxu1  ;;  %v1862_v50 = vpop.f32.mrb[43].mxu0 }
 0x143   :  { %v1903_v51 = vpop.f32.mrb[43].mxu1  ;;  %v2248_v54 = vcombine.low %v1858_v19, %v1860_v39 }
 0x144   :  { %v2249_v55 = vcombine.low %v1899_v43, %v1901_v46 }
 0x145   :  { %v2256_v57 = vrot.slane %v2248_v54, %v2812_v47 }
 0x146   :  { %v2263_v60 = vrot.slane %v2249_v55, %v2812_v47 }
 0x147   :  { %v1939_v1 = vpop.f32.mrb[44].mxu0 }
 0x148   :  { %v2264_v63 = vcombine.low %v2256_v57, %v2263_v60  ;;  %v1980_v2 = vpop.f32.mrb[44].mxu1  ;;  %v1940_v3 = vadd.f32 %v1939_v1, %v324_v0  ;;  %v1941_v5 = vpop.f32.mrb[45].mxu0 }
 0x149   :  { %v1981_v4 = vadd.f32 %v1980_v2, %v332_v56  ;;  %v1982_v6 = vpop.f32.mrb[45].mxu1  ;;  %v1942_v52 = vadd.f32 %v1941_v5, %v328_v61  ;;  %v1943_v8 = vpop.f32.mrb[46].mxu0 }
 0x14a   :  { %2313 = vst [vmem:[%s2952_s3 + $0x50] sm:$0xff] %v2264_v63  ;;  %v1983_v53 = vadd.f32 %v1982_v6, %v336_v62  ;;  %v1984_v9 = vpop.f32.mrb[46].mxu1  ;;  %v1944_v59 = vpop.f32.mrb[47].mxu0 }
 0x14b   :  { %v1985_v10 = vpop.f32.mrb[47].mxu1  ;;  %v2265_v11 = vcombine.low %v1940_v3, %v1942_v52 }
 0x14c   :  { %v2266_v12 = vcombine.low %v1981_v4, %v1983_v53 }
 0x14d   :  { %v2273_v14 = vrot.slane %v2265_v11, %v2812_v47 }
 0x14e   :  { %v2280_v15 = vrot.slane %v2266_v12, %v2812_v47 }
 0x14f   :  { %v2021_v18 = vpop.f32.mrb[48].mxu0 }
 0x150   :  { %v2281_v17 = vcombine.low %v2273_v14, %v2280_v15  ;;  %v2022_v20 = vadd.f32 %v2021_v18, %v340_v13  ;;  %v2023_v21 = vpop.f32.mrb[49].mxu0 }
 0x151   :  { %v2024_v22 = vadd.f32 %v2023_v21, %v344_v16  ;;  %v2025_v23 = vpop.f32.mrb[50].mxu0 }
 0x152   :  { %2314 = vst [vmem:[%s2952_s3 + $0x58] sm:$0xff] %v2281_v17  ;;  %v2026_v24 = vpop.f32.mrb[51].mxu0 }
 0x153   :  { %v2282_v25 = vcombine.low %v2022_v20, %v2024_v22 }
 0x155   :  { %2446 = vst.sshfl [vmem:[%s2952_s3 + $0x60] sm:$0x33 pattern:$0x76325410] %v2282_v25 }
 0x156   :  { %2320 = vsyncpa [#allocation3], 1 }

</bundles_post_ra>
